<compile_context>
chip_gen: v7x
topology: tpu7x:2x2x1
jax: 0.10.0
libtpu: 0.0.40
codegen_flags: <defaults>
</compile_context>

<pallas_src>
import jax
import jax.numpy as jnp
from jax.experimental import pallas as pl
from jax.experimental.pallas import tpu as pltpu


def decoder_kernel(x_ref, w1_ref, b1_ref, w2_ref, b2_ref, o_ref):
    # Layer 1: Linear + ReLU (MXU matmul, f32 accumulate).
    h = jnp.dot(x_ref[...], w1_ref[...], preferred_element_type=jnp.float32)
    h = jnp.maximum(h + b1_ref[...], 0.0)
    # Layer 2: Linear.
    y = jnp.dot(h, w2_ref[...], preferred_element_type=jnp.float32)
    o_ref[...] = (y + b2_ref[...]).astype(o_ref.dtype)


def _round_up(x, m):
    return ((x + m - 1) // m) * m


def _choose_pack(batch, out_dim, max_pack=8):
    """Pick P rows to pack per lane row so the packed output is ~256 lanes wide.

    P must divide the batch exactly (packing is a pure row-major
    reinterpretation of the same flat buffer)."""
    if out_dim >= 256:
        return 1
    p = min(max_pack, max(1, pl.cdiv(256, out_dim)))
    while p > 1 and batch % p != 0:
        p -= 1
    return p


def decoder_forward(x, w1, b1, w2, b2, *, window_size, num_sensors, block_b=4096):
    """x: (B, ...) -> flattened to (B, ws//8*S).
    w1: (in_dim, hid_dim), w2: (hid_dim, out_dim)  (pre-transposed nn.Linear weights)
    b1: (hid_dim,), b2: (out_dim,).
    Returns (B, window_size, num_sensors)."""
    B = x.shape[0]
    xf = x.reshape(B, -1)
    in_dim = xf.shape[1]
    hid_dim = w1.shape[1]
    out_dim = w2.shape[1]
    assert out_dim == window_size * num_sensors

    # ---- Lane-dense row packing with block-diagonal weights -----------------
    P = _choose_pack(B, out_dim)
    Bp = B // P
    pin, phid, pout = P * in_dim, P * hid_dim, P * out_dim

    xp = xf.reshape(Bp, pin)                              # free row-major reshape
    eye = jnp.eye(P, dtype=w1.dtype)
    w1p = jnp.kron(eye, w1)                               # (pin, phid) block-diag
    b1p = jnp.tile(b1, P).reshape(1, phid)
    w2p = jnp.kron(eye, w2)                               # (phid, pout) block-diag
    b2p = jnp.tile(b2, P).reshape(1, pout)

    # ---- Batch tile selection (big tiles; v7x 2-TC split; VMEM budget) ------
    bytes_per_row = 4 * (pin + pout)                      # x tile + out tile, f32
    weight_bytes = 4 * (pin * phid + phid * pout + phid + pout)
    vmem_budget = 40 << 20                                # v7x-safe working-set cap

    if Bp <= 16:
        tb = Bp                                           # full-array block (tiny batch)
    else:
        tb = min(block_b, _round_up(pl.cdiv(Bp, 2), 8))   # >=2 steps -> both v7x TCs
        max_rows = max(8, ((vmem_budget - weight_bytes) // (2 * bytes_per_row)) // 8 * 8)
        tb = max(8, min(tb, max_rows))
    grid = (pl.cdiv(Bp, tb),)

    vmem_limit = int(min(max(2 * tb * bytes_per_row + weight_bytes + (4 << 20),
                             16 << 20), 48 << 20))

    cost = pl.CostEstimate(
        flops=2 * Bp * (pin * phid + phid * pout),
        transcendentals=0,
        bytes_accessed=4 * (Bp * (pin + pout)
                            + pin * phid + phid * pout + phid + pout),
    )

    def run(single_buffer_weights):
        # Grid-invariant operands don't need a second pipeline buffer.
        res_kw = (dict(pipeline_mode=pl.Buffered(1))
                  if single_buffer_weights else {})
        return pl.pallas_call(
            decoder_kernel,
            out_shape=jax.ShapeDtypeStruct((Bp, pout), jnp.float32),
            grid=grid,
            in_specs=[
                pl.BlockSpec((tb, pin), lambda i: (i, 0)),             # x batch tile
                pl.BlockSpec((pin, phid), lambda i: (0, 0), **res_kw),  # W1 (resident)
                pl.BlockSpec((1, phid), lambda i: (0, 0), **res_kw),    # b1 (resident)
                pl.BlockSpec((phid, pout), lambda i: (0, 0), **res_kw), # W2 (resident)
                pl.BlockSpec((1, pout), lambda i: (0, 0), **res_kw),    # b2 (resident)
            ],
            out_specs=pl.BlockSpec((tb, pout), lambda i: (i, 0)),
            compiler_params=pltpu.CompilerParams(
                dimension_semantics=("parallel",),
                vmem_limit_bytes=vmem_limit,
            ),
            cost_estimate=cost,
        )(xp, w1p, b1p, w2p, b2p)

    try:
        out2d = run(True)
    except Exception:
        # TODO(synk): pl.Buffered(1) on grid-invariant inputs unsupported on this
        # jax version; fall back to the default double-buffered pipeline.
        out2d = run(False)

    # Packed rows are consecutive original rows, so this reshape is the same
    # flat memory image as torch's .view(-1, ws, S).
    return out2d.reshape(-1, window_size, num_sensors)


def decoder_ref(x, w1, b1, w2, b2, *, window_size, num_sensors):
    """Pure-JAX reference mirroring the PyTorch forward (same matmul path)."""
    B = x.shape[0]
    xf = x.reshape(B, -1)
    h = jnp.maximum(jnp.dot(xf, w1) + b1, 0.0)
    y = jnp.dot(h, w2) + b2
    return y.reshape(-1, window_size, num_sensors)


if __name__ == "__main__":
    NUM_SENSORS = 4
    WINDOW_SIZE = 16

    in_dim = WINDOW_SIZE // 8 * NUM_SENSORS      # 8
    hid_dim = WINDOW_SIZE // 2 * NUM_SENSORS     # 32
    out_dim = WINDOW_SIZE * NUM_SENSORS          # 64

    key = jax.random.PRNGKey(0)
    k_x, k_w1, k_b1, k_w2, k_b2, k_x2 = jax.random.split(key, 6)

    # nn.Linear params, stored pre-transposed as (in, out) = W^T so the kernel
    # computes row-major x @ W_t + b directly on the MXU.
    bound1 = 1.0 / (in_dim ** 0.5)
    w1 = jax.random.uniform(k_w1, (in_dim, hid_dim), jnp.float32, -bound1, bound1)
    b1 = jax.random.uniform(k_b1, (hid_dim,), jnp.float32, -bound1, bound1)
    bound2 = 1.0 / (hid_dim ** 0.5)
    w2 = jax.random.uniform(k_w2, (hid_dim, out_dim), jnp.float32, -bound2, bound2)
    b2 = jax.random.uniform(k_b2, (out_dim,), jnp.float32, -bound2, bound2)

    # Case 1: tiny batch (single grid step, fully packed 256-wide output tile).
    BATCH = 8
    x = jax.random.normal(k_x, (BATCH, WINDOW_SIZE // 8, NUM_SENSORS),
                          dtype=jnp.float32)
    out = jax.block_until_ready(
        decoder_forward(x, w1, b1, w2, b2,
                        window_size=WINDOW_SIZE, num_sensors=NUM_SENSORS))
    ref = decoder_ref(x, w1, b1, w2, b2,
                      window_size=WINDOW_SIZE, num_sensors=NUM_SENSORS)
    assert out.shape == (BATCH, WINDOW_SIZE, NUM_SENSORS)
    assert jnp.allclose(out, ref, atol=1e-4, rtol=1e-4), "mismatch vs reference (tiny batch)"

    # Case 2: moderate batch -> multi-step grid with a ragged last tile
    # (exercises the padded-writeback path flagged in the review).
    BATCH2 = 656
    x2 = jax.random.normal(k_x2, (BATCH2, WINDOW_SIZE // 8, NUM_SENSORS),
                           dtype=jnp.float32)
    out2 = jax.block_until_ready(
        decoder_forward(x2, w1, b1, w2, b2,
                        window_size=WINDOW_SIZE, num_sensors=NUM_SENSORS))
    ref2 = decoder_ref(x2, w1, b1, w2, b2,
                       window_size=WINDOW_SIZE, num_sensors=NUM_SENSORS)
    assert out2.shape == (BATCH2, WINDOW_SIZE, NUM_SENSORS)
    assert jnp.allclose(out2, ref2, atol=1e-4, rtol=1e-4), "mismatch vs reference (ragged grid)"

    print("KERNEL_OK")
</pallas_src>

<mosaic_0001>
module attributes {stable_mosaic.version = 11 : i64} {
  func.func @decoder_kernel(%arg0: i32, %arg1: memref<2x32xf32, #tpu.memory_space<vmem>>, %arg2: memref<32x128xf32, #tpu.memory_space<vmem>>, %arg3: memref<1x128xf32, #tpu.memory_space<vmem>>, %arg4: memref<128x256xf32, #tpu.memory_space<vmem>>, %arg5: memref<1x256xf32, #tpu.memory_space<vmem>>, %arg6: memref<2x256xf32, #tpu.memory_space<vmem>>) attributes {dimension_semantics = [#tpu.dimension_semantics<parallel>], iteration_bounds = array<i64: 1>, scalar_prefetch = 0 : i64, scratch_operands = 0 : i64, tpu.core_type = #tpu.core_type<tc>, window_params = [{transform_indices = @transform_0, window_bounds = array<i64: 2, 32>}, {pipeline_mode = #tpu.pipeline_mode<synchronous>, transform_indices = @transform_1, window_bounds = array<i64: 32, 128>}, {pipeline_mode = #tpu.pipeline_mode<synchronous>, transform_indices = @transform_2, window_bounds = array<i64: 1, 128>}, {pipeline_mode = #tpu.pipeline_mode<synchronous>, transform_indices = @transform_3, window_bounds = array<i64: 128, 256>}, {pipeline_mode = #tpu.pipeline_mode<synchronous>, transform_indices = @transform_4, window_bounds = array<i64: 1, 256>}, {transform_indices = @transform_5, window_bounds = array<i64: 2, 256>}]} {
    %c0 = arith.constant 0 : index
    %c0_0 = arith.constant 0 : index
    %0 = vector.load %arg1[%c0, %c0_0] : memref<2x32xf32, #tpu.memory_space<vmem>>, vector<2x32xf32>
    %c0_1 = arith.constant 0 : index
    %c0_2 = arith.constant 0 : index
    %1 = vector.load %arg2[%c0_1, %c0_2] : memref<32x128xf32, #tpu.memory_space<vmem>>, vector<32x128xf32>
    %cst = arith.constant dense<0.000000e+00> : vector<2x128xf32>
    %2 = tpu.matmul %0, %1, %cst {dimension_numbers = #tpu.dot_dimension_numbers<[1], [0], [0], [1], [0, 0, 1, 1], [], []>} : vector<2x32xf32>, vector<32x128xf32>, vector<2x128xf32> -> vector<2x128xf32>
    %c0_3 = arith.constant 0 : index
    %c0_4 = arith.constant 0 : index
    %3 = vector.load %arg3[%c0_3, %c0_4] : memref<1x128xf32, #tpu.memory_space<vmem>>, vector<1x128xf32>
    %4 = vector.broadcast %3 : vector<1x128xf32> to vector<2x128xf32>
    %5 = arith.addf %2, %4 : vector<2x128xf32>
    %cst_5 = arith.constant 0.000000e+00 : f32
    %6 = vector.broadcast %cst_5 : f32 to vector<2x128xf32>
    %7 = arith.maximumf %5, %6 : vector<2x128xf32>
    %c0_6 = arith.constant 0 : index
    %c0_7 = arith.constant 0 : index
    %8 = vector.load %arg4[%c0_6, %c0_7] : memref<128x256xf32, #tpu.memory_space<vmem>>, vector<128x256xf32>
    %cst_8 = arith.constant dense<0.000000e+00> : vector<2x256xf32>
    %9 = tpu.matmul %7, %8, %cst_8 {dimension_numbers = #tpu.dot_dimension_numbers<[1], [0], [0], [1], [0, 0, 1, 1], [], []>} : vector<2x128xf32>, vector<128x256xf32>, vector<2x256xf32> -> vector<2x256xf32>
    %c0_9 = arith.constant 0 : index
    %c0_10 = arith.constant 0 : index
    %10 = vector.load %arg5[%c0_9, %c0_10] : memref<1x256xf32, #tpu.memory_space<vmem>>, vector<1x256xf32>
    %11 = vector.broadcast %10 : vector<1x256xf32> to vector<2x256xf32>
    %12 = arith.addf %9, %11 : vector<2x256xf32>
    %c0_11 = arith.constant 0 : index
    %c0_12 = arith.constant 0 : index
    %13 = vector.load %arg6[%c0_11, %c0_12] : memref<2x256xf32, #tpu.memory_space<vmem>>, vector<2x256xf32>
    tpu.vector_store %arg6[%c0_11, %c0_12], %12 {strides = array<i32>} : memref<2x256xf32, #tpu.memory_space<vmem>>, vector<2x256xf32>,
    return
  }
  func.func @transform_0(%arg0: i32) -> (i32, i32) {
    %c0_i32 = arith.constant 0 : i32
    %c0_i32_0 = arith.constant 0 : i32
    return %arg0, %c0_i32 : i32, i32
  }
  func.func @transform_1(%arg0: i32) -> (i32, i32) {
    %c0_i32 = arith.constant 0 : i32
    %c0_i32_0 = arith.constant 0 : i32
    %c0_i32_1 = arith.constant 0 : i32
    return %c0_i32, %c0_i32_0 : i32, i32
  }
  func.func @transform_2(%arg0: i32) -> (i32, i32) {
    %c0_i32 = arith.constant 0 : i32
    %c0_i32_0 = arith.constant 0 : i32
    %c0_i32_1 = arith.constant 0 : i32
    return %c0_i32, %c0_i32_0 : i32, i32
  }
  func.func @transform_3(%arg0: i32) -> (i32, i32) {
    %c0_i32 = arith.constant 0 : i32
    %c0_i32_0 = arith.constant 0 : i32
    %c0_i32_1 = arith.constant 0 : i32
    return %c0_i32, %c0_i32_0 : i32, i32
  }
  func.func @transform_4(%arg0: i32) -> (i32, i32) {
    %c0_i32 = arith.constant 0 : i32
    %c0_i32_0 = arith.constant 0 : i32
    %c0_i32_1 = arith.constant 0 : i32
    return %c0_i32, %c0_i32_0 : i32, i32
  }
  func.func @transform_5(%arg0: i32) -> (i32, i32) {
    %c0_i32 = arith.constant 0 : i32
    %c0_i32_0 = arith.constant 0 : i32
    return %arg0, %c0_i32 : i32, i32
  }
}

module attributes {stable_mosaic.version = 11 : i64} {
  func.func @decoder_kernel(%arg0: i32, %arg1: memref<2x32xf32, #tpu.memory_space<vmem>>, %arg2: memref<32x128xf32, #tpu.memory_space<vmem>>, %arg3: memref<1x128xf32, #tpu.memory_space<vmem>>, %arg4: memref<128x256xf32, #tpu.memory_space<vmem>>, %arg5: memref<1x256xf32, #tpu.memory_space<vmem>>, %arg6: memref<2x256xf32, #tpu.memory_space<vmem>>) attributes {dimension_semantics = [#tpu.dimension_semantics<parallel>], iteration_bounds = array<i64: 1>, scalar_prefetch = 0 : i64, scratch_operands = 0 : i64, tpu.core_type = #tpu.core_type<tc>, window_params = [{transform_indices = @transform_0, window_bounds = array<i64: 2, 32>}, {pipeline_mode = #tpu.pipeline_mode<synchronous>, transform_indices = @transform_1, window_bounds = array<i64: 32, 128>}, {pipeline_mode = #tpu.pipeline_mode<synchronous>, transform_indices = @transform_2, window_bounds = array<i64: 1, 128>}, {pipeline_mode = #tpu.pipeline_mode<synchronous>, transform_indices = @transform_3, window_bounds = array<i64: 128, 256>}, {pipeline_mode = #tpu.pipeline_mode<synchronous>, transform_indices = @transform_4, window_bounds = array<i64: 1, 256>}, {transform_indices = @transform_5, window_bounds = array<i64: 2, 256>}]} {
    %c0 = arith.constant 0 : index
    %c0_0 = arith.constant 0 : index
    %0 = vector.load %arg1[%c0, %c0_0] : memref<2x32xf32, #tpu.memory_space<vmem>>, vector<2x32xf32>
    %c0_1 = arith.constant 0 : index
    %c0_2 = arith.constant 0 : index
    %1 = vector.load %arg2[%c0_1, %c0_2] : memref<32x128xf32, #tpu.memory_space<vmem>>, vector<32x128xf32>
    %cst = arith.constant dense<0.000000e+00> : vector<2x128xf32>
    %2 = tpu.matmul %0, %1, %cst {dimension_numbers = #tpu.dot_dimension_numbers<[1], [0], [0], [1], [0, 0, 1, 1], [], []>} : vector<2x32xf32>, vector<32x128xf32>, vector<2x128xf32> -> vector<2x128xf32>
    %c0_3 = arith.constant 0 : index
    %c0_4 = arith.constant 0 : index
    %3 = vector.load %arg3[%c0_3, %c0_4] : memref<1x128xf32, #tpu.memory_space<vmem>>, vector<1x128xf32>
    %4 = vector.broadcast %3 : vector<1x128xf32> to vector<2x128xf32>
    %5 = arith.addf %2, %4 : vector<2x128xf32>
    %cst_5 = arith.constant 0.000000e+00 : f32
    %6 = vector.broadcast %cst_5 : f32 to vector<2x128xf32>
    %7 = arith.maximumf %5, %6 : vector<2x128xf32>
    %c0_6 = arith.constant 0 : index
    %c0_7 = arith.constant 0 : index
    %8 = vector.load %arg4[%c0_6, %c0_7] : memref<128x256xf32, #tpu.memory_space<vmem>>, vector<128x256xf32>
    %cst_8 = arith.constant dense<0.000000e+00> : vector<2x256xf32>
    %9 = tpu.matmul %7, %8, %cst_8 {dimension_numbers = #tpu.dot_dimension_numbers<[1], [0], [0], [1], [0, 0, 1, 1], [], []>} : vector<2x128xf32>, vector<128x256xf32>, vector<2x256xf32> -> vector<2x256xf32>
    %c0_9 = arith.constant 0 : index
    %c0_10 = arith.constant 0 : index
    %10 = vector.load %arg5[%c0_9, %c0_10] : memref<1x256xf32, #tpu.memory_space<vmem>>, vector<1x256xf32>
    %11 = vector.broadcast %10 : vector<1x256xf32> to vector<2x256xf32>
    %12 = arith.addf %9, %11 : vector<2x256xf32>
    %c0_11 = arith.constant 0 : index
    %c0_12 = arith.constant 0 : index
    %13 = vector.load %arg6[%c0_11, %c0_12] : memref<2x256xf32, #tpu.memory_space<vmem>>, vector<2x256xf32>
    tpu.vector_store %arg6[%c0_11, %c0_12], %12 {strides = array<i32>} : memref<2x256xf32, #tpu.memory_space<vmem>>, vector<2x256xf32>,
    return
  }
  func.func @transform_0(%arg0: i32) -> (i32, i32) {
    %c0_i32 = arith.constant 0 : i32
    %c0_i32_0 = arith.constant 0 : i32
    return %arg0, %c0_i32 : i32, i32
  }
  func.func @transform_1(%arg0: i32) -> (i32, i32) {
    %c0_i32 = arith.constant 0 : i32
    %c0_i32_0 = arith.constant 0 : i32
    %c0_i32_1 = arith.constant 0 : i32
    return %c0_i32, %c0_i32_0 : i32, i32
  }
  func.func @transform_2(%arg0: i32) -> (i32, i32) {
    %c0_i32 = arith.constant 0 : i32
    %c0_i32_0 = arith.constant 0 : i32
    %c0_i32_1 = arith.constant 0 : i32
    return %c0_i32, %c0_i32_0 : i32, i32
  }
  func.func @transform_3(%arg0: i32) -> (i32, i32) {
    %c0_i32 = arith.constant 0 : i32
    %c0_i32_0 = arith.constant 0 : i32
    %c0_i32_1 = arith.constant 0 : i32
    return %c0_i32, %c0_i32_0 : i32, i32
  }
  func.func @transform_4(%arg0: i32) -> (i32, i32) {
    %c0_i32 = arith.constant 0 : i32
    %c0_i32_0 = arith.constant 0 : i32
    %c0_i32_1 = arith.constant 0 : i32
    return %c0_i32, %c0_i32_0 : i32, i32
  }
  func.func @transform_5(%arg0: i32) -> (i32, i32) {
    %c0_i32 = arith.constant 0 : i32
    %c0_i32_0 = arith.constant 0 : i32
    return %arg0, %c0_i32 : i32, i32
  }
}

</mosaic_0001>

<bundles_post_ra>
// kernel: tpu_custom_call.1
= control target key start
LH: loop header
LB: loop body
LE: loop exit
PB: predicated region body
PF: predicated region fallthrough
CT: control target
= control target key end

     0   :  { %10 = vsyncpa [#allocation3], 0  ;;  %s547_s0 = inlined_call_operand.hbm [shape: f32[2,32], index: 0, kind: input, shape index: {}]   ;;  %s548_s1 = inlined_call_operand.hbm [shape: f32[32,128], index: 1, kind: input, shape index: {}]   ;;  %s549_s2 = inlined_call_operand.vmem [shape: f32[1,128], index: 2, kind: input, shape index: {}]   ;;  %s550_s3 = inlined_call_operand.hbm [shape: f32[128,256], index: 3, kind: input, shape index: {}]   ;;  %s551_s4 = inlined_call_operand.vmem [shape: f32[1,256], index: 4, kind: input, shape index: {}]   ;;  %s552_s5 = inlined_call_operand.hbm [shape: f32[2,256], index: 5, kind: output, shape index: {}]  }
   0x1   :  { %11 = vsyncpa [#allocation6], 0 }
   0x2   :  { %12 = vsyncpa [#allocation4], 0  ;;  %s452_s18 = smov [#allocation5]   ;;  %s358_s22 = scalar_lea.hbm %s548_s1, 512 }
   0x3   :  { %s28_s19 = sshll.u32 %s452_s18, 4  ;;  %p359_p0 = scmp.ne.s32.totalorder %s548_s1, %s358_s22  ;;  %s29_s19 = int_to_ptr.vmem [resolvable:$true] %s28_s19 }
   0x4   :  { %p362_p1 = scmp.lt.u32.totalorder %s358_s22, %s548_s1 }
   0x6   :  { %p364_p2 = pnand %p362_p1, %p359_p0 }
   0x8   :  { %367 = shalt.err (!%p364_p2)
}
   0x9   :  { %s368_s27 = scalar_lea.vmem %s29_s19, 512  ;;  %p373_p4 = scmp.lt.s32.totalorder %s29_s19, %s29_s19 }
   0xa   :  { %p369_p3 = scmp.ne.s32.totalorder %s29_s19, %s368_s27  ;;  %p374_p5 = scmp.lt.s32.totalorder %s368_s27, %s368_s27 }
   0xc   :  { %p375_p6 = por %p374_p5, %p373_p4 }
   0xe   :  { %p376_p7 = pnand %p375_p6, %p369_p3 }
  0x10   :  { %379 = shalt.err (!%p376_p7)
}
  0x11   :  { %s453_s28 = smov 128   ;;  %s454_s29 = smov 8  }
  0x12   :  { %34 = dma.hbm_to_vmem [thread:$0]  %s548_s1, 512, %s29_s19, [#allocation6], %s453_s28, %s453_s28, %s454_s29  }
  0x13   :  { %s455_s7 = smov [#allocation2]   ;;  %s456_s9 = smov [#allocation7]  }
  0x14   :  { %s19_s8 = sshll.u32 %s455_s7, 4  ;;  %s42_s10 = sshll.u32 %s456_s9, 4  ;;  %s20_s8 = int_to_ptr.vmem [resolvable:$true] %s19_s8  ;;  %s43_s10 = int_to_ptr.vmem [resolvable:$true] %s42_s10 }
  0x15   :  { %s380_s13 = scalar_lea.hbm %s547_s0, 32 }
  0x16   :  { %p381_p8 = scmp.ne.s32.totalorder %s547_s0, %s380_s13  ;;  %p384_p9 = scmp.lt.u32.totalorder %s380_s13, %s547_s0 }
  0x18   :  { %p386_p10 = pnand %p384_p9, %p381_p8 }
  0x1a   :  { %389 = shalt.err (!%p386_p10)
}
  0x1b   :  { %s390_s1 = scalar_lea.vmem %s20_s8, 32  ;;  %p395_p12 = scmp.lt.s32.totalorder %s20_s8, %s20_s8 }
  0x1c   :  { %p391_p11 = scmp.ne.s32.totalorder %s20_s8, %s390_s1  ;;  %p396_p13 = scmp.lt.s32.totalorder %s390_s1, %s390_s1 }
  0x1e   :  { %p397_p0 = por %p396_p13, %p395_p12 }
  0x20   :  { %p398_p1 = pnand %p397_p0, %p391_p11 }
  0x22   :  { %401 = shalt.err (!%p398_p1)
}
  0x23   :  { %22 = dma.hbm_to_vmem [thread:$0]  %s547_s0, 32, %s20_s8, [#allocation3]  }
  0x24   :  { %s402_s22 = scalar_lea.hbm %s550_s3, 4096 }
  0x25   :  { %p403_p2 = scmp.ne.s32.totalorder %s550_s3, %s402_s22  ;;  %p406_p3 = scmp.lt.u32.totalorder %s402_s22, %s550_s3 }
  0x27   :  { %p408_p4 = pnand %p406_p3, %p403_p2 }
  0x29   :  { %411 = shalt.err (!%p408_p4)
}
  0x2a   :  { %s412_s27 = scalar_lea.vmem %s43_s10, 4096  ;;  %p417_p6 = scmp.lt.s32.totalorder %s43_s10, %s43_s10 }
  0x2b   :  { %p413_p5 = scmp.ne.s32.totalorder %s43_s10, %s412_s27  ;;  %p418_p7 = scmp.lt.s32.totalorder %s412_s27, %s412_s27 }
  0x2d   :  { %p419_p8 = por %p418_p7, %p417_p6 }
  0x2f   :  { %p420_p9 = pnand %p419_p8, %p413_p5 }
  0x31   :  { %423 = shalt.err (!%p420_p9)
}
  0x32   :  { %s457_s0 = smov 256   ;;  %s458_s28 = smov 16  }
  0x33   :  { %48 = dma.hbm_to_vmem [thread:$0]  %s550_s3, 4096, %s43_s10, [#allocation6], %s457_s0, %s457_s0, %s458_s28  }
  0x34   :  { %446 = dma.done.wait [#allocation3], 32  }
  0x35   :  { %447 = vsyncadd [#allocation3], 4294967264 }
  0x36   :  { %448 = dma.done.wait [#allocation6], 4608  }
  0x37   :  { %449 = vsyncadd [#allocation6], 4294962688  ;;  %v459_v0 = vmov 0.0|0.0   ;;  %vm460_vm0 = vmmov 0   ;;  %v461_v1 = vmov 0.0   ;;  %v61_v2 = vld [vmem:[#allocation5] sm:$0xff]  ;;  %v181_v62 = vlaneseq }
  0x38   :  { %309 = vmatprep.subr.bf16.mxu0 %v459_v0  ;;  %306 = vmatprep.mubr.msk.f32.mxu0 %vm460_vm0, %v461_v1  ;;  %v62_v3 = vld [vmem:[#allocation5 + $0x8] sm:$0xff]  ;;  %v63_v4 = vld [vmem:[#allocation5 + $0x10] sm:$0xff]  ;;  %v64_v6 = vld [vmem:[#allocation5 + $0x18] sm:$0xff]  ;;  %vm72_vm1 = vcmask 261120   ;;  %s462_s9 = smov [#allocation8]  }
  0x39   :  { %255 = vmatprep.mubr.f32.mxu1 %v461_v1  ;;  %v310_v5 = vpack.c.bf16 %v62_v3, %v61_v2  ;;  %v148_v7 = vld [vmem:[#allocation7 + $0x8] sm:$0xff]  ;;  %v150_v8 = vld [vmem:[#allocation7 + $0x18] sm:$0xff]  ;;  %v147_v9 = vld [vmem:[#allocation7] sm:$0xff]  ;;  %v313_v11 = vpack.c.bf16 %v64_v6, %v63_v4  ;;  %v182_v63 = vshrl.u32 %v181_v62, 7 }
  0x3a   :  { %v149_v10 = vld [vmem:[#allocation7 + $0x10] sm:$0xff]  ;;  %v315_v12 = vpack.c.bf16 %v150_v8, %v148_v7  ;;  %v152_v14 = vld [vmem:[#allocation7 + $0x28] sm:$0xff]  ;;  %v154_v15 = vld [vmem:[#allocation7 + $0x38] sm:$0xff] }
  0x3b   :  { %311 = vmatpush3.bf16.msra.mxu0 %v310_v5  ;;  %v317_v13 = vpack.c.bf16 %v149_v10, %v147_v9  ;;  %v151_v16 = vld [vmem:[#allocation7 + $0x20] sm:$0xff]  ;;  %v319_v17 = vpack.c.bf16 %v154_v15, %v152_v14  ;;  %v153_v18 = vld [vmem:[#allocation7 + $0x30] sm:$0xff]  ;;  %v156_v19 = vld [vmem:[#allocation7 + $0x48] sm:$0xff]  ;;  %v187_v2 = vsub.s32 1, %v182_v63 }
  0x3c   :  { %312 = vmatprep.subr.bf16.mxu0 %v459_v0  ;;  %v158_v20 = vld [vmem:[#allocation7 + $0x58] sm:$0xff]  ;;  %316 = vmatprep.subr.bf16.mxu1 %v315_v12  ;;  %v321_v21 = vpack.c.bf16 %v153_v18, %v151_v16  ;;  %v155_v24 = vld [vmem:[#allocation7 + $0x40] sm:$0xff]  ;;  %v157_v25 = vld [vmem:[#allocation7 + $0x50] sm:$0xff]  ;;  %v183_v0 = vsub.s32 0, %v182_v63 }
  0x3d   :  { %318 = vmatpush1.bf16.msra.mxu1 %v317_v13  ;;  %v60_v22 = vld [vmem:[#allocation2] sm:$0x3]  ;;  %v323_v23 = vpack.c.bf16 %v158_v20, %v156_v19  ;;  %v160_v26 = vld [vmem:[#allocation7 + $0x68] sm:$0xff]  ;;  %v325_v28 = vpack.c.bf16 %v157_v25, %v155_v24  ;;  %v159_v30 = vld [vmem:[#allocation7 + $0x60] sm:$0xff] }
  0x3e   :  { %320 = vmatprep.subr.bf16.mxu1 %v319_v17  ;;  %v162_v27 = vld [vmem:[#allocation7 + $0x78] sm:$0xff]  ;;  %v161_v31 = vld [vmem:[#allocation7 + $0x70] sm:$0xff]  ;;  %v164_v32 = vld [vmem:[#allocation7 + $0x88] sm:$0xff] }
  0x3f   :  { %314 = vmatpush3.bf16.msra.mxu0 %v313_v11  ;;  %v327_v29 = vpack.c.bf16 %v162_v27, %v160_v26  ;;  %v166_v33 = vld [vmem:[#allocation7 + $0x98] sm:$0xff]  ;;  %v329_v34 = vpack.c.bf16 %v161_v31, %v159_v30  ;;  %v163_v36 = vld [vmem:[#allocation7 + $0x80] sm:$0xff]  ;;  %v165_v37 = vld [vmem:[#allocation7 + $0x90] sm:$0xff] }
  0x40   :  { %v331_v35 = vpack.c.bf16 %v166_v33, %v164_v32  ;;  %v168_v38 = vld [vmem:[#allocation7 + $0xa8] sm:$0xff]  ;;  %v170_v39 = vld [vmem:[#allocation7 + $0xb8] sm:$0xff]  ;;  %v333_v40 = vpack.c.bf16 %v165_v37, %v163_v36  ;;  %v167_v42 = vld [vmem:[#allocation7 + $0xa0] sm:$0xff] }
  0x41   :  { %322 = vmatpush1.bf16.msra.mxu1 %v321_v21  ;;  %v335_v41 = vpack.c.bf16 %v170_v39, %v168_v38  ;;  %v169_v43 = vld [vmem:[#allocation7 + $0xb0] sm:$0xff]  ;;  %v172_v44 = vld [vmem:[#allocation7 + $0xc8] sm:$0xff]  ;;  %v174_v45 = vld [vmem:[#allocation7 + $0xd8] sm:$0xff] }
  0x42   :  { %307 = vmatmul.mubr.msk.f32.vlgmr.msra.gmra.mrb[0].mxu0 %vm72_vm1, %v60_v22  ;;  %324 = vmatprep.subr.bf16.mxu1 %v323_v23  ;;  %v337_v46 = vpack.c.bf16 %v169_v43, %v167_v42  ;;  %v339_v47 = vpack.c.bf16 %v174_v45, %v172_v44  ;;  %v171_v48 = vld [vmem:[#allocation7 + $0xc0] sm:$0xff]  ;;  %v173_v49 = vld [vmem:[#allocation7 + $0xd0] sm:$0xff]  ;;  %v176_v51 = vld [vmem:[#allocation7 + $0xe8] sm:$0xff] }
  0x43   :  { %v341_v50 = vpack.c.bf16 %v173_v49, %v171_v48  ;;  %v178_v52 = vld [vmem:[#allocation7 + $0xf8] sm:$0xff]  ;;  %v175_v54 = vld [vmem:[#allocation7 + $0xe0] sm:$0xff]  ;;  %v177_v55 = vld [vmem:[#allocation7 + $0xf0] sm:$0xff] }
  0x44   :  { %v343_v53 = vpack.c.bf16 %v178_v52, %v176_v51  ;;  %v345_v56 = vpack.c.bf16 %v177_v55, %v175_v54  ;;  %v290_v57 = vld [vmem:[%s549_s2] ss:$0 sm:$0xff]  ;;  %s280_s2 = sshll.u32 %s462_s9, 4  ;;  %s281_s2 = int_to_ptr.vmem [resolvable:$true] %s280_s2 }
  0x45   :  { %326 = vmatpush1.bf16.msra.mxu1 %v325_v28  ;;  %v179_v1 = vld [vmem:[%s551_s4] sm:$0x3]  ;;  %s424_s10 = scalar_lea.vmem %s281_s2, 64  ;;  %p429_p11 = scmp.lt.s32.totalorder %s281_s2, %s281_s2 }
  0x46   :  { %328 = vmatprep.subr.bf16.mxu1 %v327_v29  ;;  %v184_v3 = vrot.slane %v179_v1, %v183_v0  ;;  %v188_v4 = vrot.slane %v179_v1, %v187_v2  ;;  %p425_p10 = scmp.ne.s32.totalorder %s281_s2, %s424_s10  ;;  %p430_p12 = scmp.lt.s32.totalorder %s424_s10, %s424_s10 }
  0x48   :  { %p431_p13 = por %p430_p12, %p429_p11 }
  0x49   :  { %330 = vmatpush1.bf16.msra.mxu1 %v329_v34 }
  0x4a   :  { %332 = vmatprep.subr.bf16.mxu1 %v331_v35  ;;  %p432_p0 = pnand %p431_p13, %p425_p10 }
  0x4d   :  { %334 = vmatpush1.bf16.msra.mxu1 %v333_v40 }
  0x4e   :  { %336 = vmatprep.subr.bf16.mxu1 %v335_v41 }
  0x51   :  { %338 = vmatpush1.bf16.msra.mxu1 %v337_v46 }
  0x52   :  { %340 = vmatprep.subr.bf16.mxu1 %v339_v47 }
  0x55   :  { %342 = vmatpush1.bf16.msra.mxu1 %v341_v50 }
  0x56   :  { %344 = vmatprep.subr.bf16.mxu1 %v343_v53 }
  0x59   :  { %346 = vmatpush1.bf16.msra.mxu1 %v345_v56 }
 0x115   :  { %v142_v58 = vpop.f32.mrb[0].mxu0 }
 0x116   :  { %v143_v59 = vadd.f32 %v290_v57, %v142_v58  ;;  %v308_v60 = vpop.f32.mrb[1].mxu0 }
 0x118   :  { %v146_v61 = vmax.f32 %v143_v59, 0.0 }
 0x11a   :  { %256 = vmatmul.mubr.f32.vlgmr.msra.gmra.mrb[0].mxu1 %v146_v61 }
 0x1ed   :  { %v257_v5 = vpop.f32.mrb[0].mxu1 }
 0x1ee   :  { %v258_v6 = vadd.f32 %v257_v5, %v184_v3  ;;  %v259_v7 = vpop.f32.mrb[1].mxu1 }
 0x1ef   :  { %v260_v8 = vadd.f32 %v259_v7, %v188_v4 }
 0x1f1   :  { %v264_v9 = vcombine.low %v258_v6, %v260_v8 }
 0x1f3   :  { %292 = vst.sshfl [vmem:[#allocation8] sm:$0x33 pattern:$0x76325410] %v264_v9 }
 0x1f4   :  { %435 = shalt.err (!%p432_p0)
}
 0x1f5   :  { %s436_s12 = scalar_lea.hbm %s552_s5, 64 }
 0x1f6   :  { %p437_p1 = scmp.ne.s32.totalorder %s552_s5, %s436_s12  ;;  %p440_p2 = scmp.lt.u32.totalorder %s436_s12, %s552_s5 }
 0x1f8   :  { %p442_p3 = pnand %p440_p2, %p437_p1 }
 0x1fa   :  { %445 = shalt.err (!%p442_p3)
}
 0x1fb   :  { %283 = dma.vmem_to_hbm [thread:$0]  %s281_s2, 64, %s552_s5, [#allocation4]  }
 0x1fc   :  { %450 = dma.done.wait [#allocation4], 64  }
 0x1fd   :  { %451 = vsyncadd [#allocation4], 4294967232 }
 0x1fe   :  { %287 = vsyncpa [#allocation3], 1 }
 0x1ff   :  { %288 = vsyncpa [#allocation6], 1 }
 0x200   :  { %289 = vsyncpa [#allocation4], 1 }

// kernel: tpu_custom_call.1
= control target key start
LH: loop header
LB: loop body
LE: loop exit
PB: predicated region body
PF: predicated region fallthrough
CT: control target
= control target key end

     0   :  { %10 = vsyncpa [#allocation3], 0  ;;  %s547_s0 = inlined_call_operand.hbm [shape: f32[2,32], index: 0, kind: input, shape index: {}]   ;;  %s548_s1 = inlined_call_operand.hbm [shape: f32[32,128], index: 1, kind: input, shape index: {}]   ;;  %s549_s2 = inlined_call_operand.vmem [shape: f32[1,128], index: 2, kind: input, shape index: {}]   ;;  %s550_s3 = inlined_call_operand.hbm [shape: f32[128,256], index: 3, kind: input, shape index: {}]   ;;  %s551_s4 = inlined_call_operand.vmem [shape: f32[1,256], index: 4, kind: input, shape index: {}]   ;;  %s552_s5 = inlined_call_operand.hbm [shape: f32[2,256], index: 5, kind: output, shape index: {}]  }
   0x1   :  { %11 = vsyncpa [#allocation6], 0 }
   0x2   :  { %12 = vsyncpa [#allocation4], 0  ;;  %s452_s18 = smov [#allocation5]   ;;  %s358_s22 = scalar_lea.hbm %s548_s1, 512 }
   0x3   :  { %s28_s19 = sshll.u32 %s452_s18, 4  ;;  %p359_p0 = scmp.ne.s32.totalorder %s548_s1, %s358_s22  ;;  %s29_s19 = int_to_ptr.vmem [resolvable:$true] %s28_s19 }
   0x4   :  { %p362_p1 = scmp.lt.u32.totalorder %s358_s22, %s548_s1 }
   0x6   :  { %p364_p2 = pnand %p362_p1, %p359_p0 }
   0x8   :  { %367 = shalt.err (!%p364_p2)
}
   0x9   :  { %s368_s27 = scalar_lea.vmem %s29_s19, 512  ;;  %p373_p4 = scmp.lt.s32.totalorder %s29_s19, %s29_s19 }
   0xa   :  { %p369_p3 = scmp.ne.s32.totalorder %s29_s19, %s368_s27  ;;  %p374_p5 = scmp.lt.s32.totalorder %s368_s27, %s368_s27 }
   0xc   :  { %p375_p6 = por %p374_p5, %p373_p4 }
   0xe   :  { %p376_p7 = pnand %p375_p6, %p369_p3 }
  0x10   :  { %379 = shalt.err (!%p376_p7)
}
  0x11   :  { %s453_s28 = smov 128   ;;  %s454_s29 = smov 8  }
  0x12   :  { %34 = dma.hbm_to_vmem [thread:$0]  %s548_s1, 512, %s29_s19, [#allocation6], %s453_s28, %s453_s28, %s454_s29  }
  0x13   :  { %s455_s7 = smov [#allocation2]   ;;  %s456_s9 = smov [#allocation7]  }
  0x14   :  { %s19_s8 = sshll.u32 %s455_s7, 4  ;;  %s42_s10 = sshll.u32 %s456_s9, 4  ;;  %s20_s8 = int_to_ptr.vmem [resolvable:$true] %s19_s8  ;;  %s43_s10 = int_to_ptr.vmem [resolvable:$true] %s42_s10 }
  0x15   :  { %s380_s13 = scalar_lea.hbm %s547_s0, 32 }
  0x16   :  { %p381_p8 = scmp.ne.s32.totalorder %s547_s0, %s380_s13  ;;  %p384_p9 = scmp.lt.u32.totalorder %s380_s13, %s547_s0 }
  0x18   :  { %p386_p10 = pnand %p384_p9, %p381_p8 }
  0x1a   :  { %389 = shalt.err (!%p386_p10)
}
  0x1b   :  { %s390_s1 = scalar_lea.vmem %s20_s8, 32  ;;  %p395_p12 = scmp.lt.s32.totalorder %s20_s8, %s20_s8 }
  0x1c   :  { %p391_p11 = scmp.ne.s32.totalorder %s20_s8, %s390_s1  ;;  %p396_p13 = scmp.lt.s32.totalorder %s390_s1, %s390_s1 }
  0x1e   :  { %p397_p0 = por %p396_p13, %p395_p12 }
  0x20   :  { %p398_p1 = pnand %p397_p0, %p391_p11 }
  0x22   :  { %401 = shalt.err (!%p398_p1)
}
  0x23   :  { %22 = dma.hbm_to_vmem [thread:$0]  %s547_s0, 32, %s20_s8, [#allocation3]  }
  0x24   :  { %s402_s22 = scalar_lea.hbm %s550_s3, 4096 }
  0x25   :  { %p403_p2 = scmp.ne.s32.totalorder %s550_s3, %s402_s22  ;;  %p406_p3 = scmp.lt.u32.totalorder %s402_s22, %s550_s3 }
  0x27   :  { %p408_p4 = pnand %p406_p3, %p403_p2 }
  0x29   :  { %411 = shalt.err (!%p408_p4)
}
  0x2a   :  { %s412_s27 = scalar_lea.vmem %s43_s10, 4096  ;;  %p417_p6 = scmp.lt.s32.totalorder %s43_s10, %s43_s10 }
  0x2b   :  { %p413_p5 = scmp.ne.s32.totalorder %s43_s10, %s412_s27  ;;  %p418_p7 = scmp.lt.s32.totalorder %s412_s27, %s412_s27 }
  0x2d   :  { %p419_p8 = por %p418_p7, %p417_p6 }
  0x2f   :  { %p420_p9 = pnand %p419_p8, %p413_p5 }
  0x31   :  { %423 = shalt.err (!%p420_p9)
}
  0x32   :  { %s457_s0 = smov 256   ;;  %s458_s28 = smov 16  }
  0x33   :  { %48 = dma.hbm_to_vmem [thread:$0]  %s550_s3, 4096, %s43_s10, [#allocation6], %s457_s0, %s457_s0, %s458_s28  }
  0x34   :  { %446 = dma.done.wait [#allocation3], 32  }
  0x35   :  { %447 = vsyncadd [#allocation3], 4294967264 }
  0x36   :  { %448 = dma.done.wait [#allocation6], 4608  }
  0x37   :  { %449 = vsyncadd [#allocation6], 4294962688  ;;  %v459_v0 = vmov 0.0|0.0   ;;  %vm460_vm0 = vmmov 0   ;;  %v461_v1 = vmov 0.0   ;;  %v61_v2 = vld [vmem:[#allocation5] sm:$0xff]  ;;  %v181_v62 = vlaneseq }
  0x38   :  { %309 = vmatprep.subr.bf16.mxu0 %v459_v0  ;;  %306 = vmatprep.mubr.msk.f32.mxu0 %vm460_vm0, %v461_v1  ;;  %v62_v3 = vld [vmem:[#allocation5 + $0x8] sm:$0xff]  ;;  %v63_v4 = vld [vmem:[#allocation5 + $0x10] sm:$0xff]  ;;  %v64_v6 = vld [vmem:[#allocation5 + $0x18] sm:$0xff]  ;;  %vm72_vm1 = vcmask 261120   ;;  %s462_s9 = smov [#allocation8]  }
  0x39   :  { %255 = vmatprep.mubr.f32.mxu1 %v461_v1  ;;  %v310_v5 = vpack.c.bf16 %v62_v3, %v61_v2  ;;  %v148_v7 = vld [vmem:[#allocation7 + $0x8] sm:$0xff]  ;;  %v150_v8 = vld [vmem:[#allocation7 + $0x18] sm:$0xff]  ;;  %v147_v9 = vld [vmem:[#allocation7] sm:$0xff]  ;;  %v313_v11 = vpack.c.bf16 %v64_v6, %v63_v4  ;;  %v182_v63 = vshrl.u32 %v181_v62, 7 }
  0x3a   :  { %v149_v10 = vld [vmem:[#allocation7 + $0x10] sm:$0xff]  ;;  %v315_v12 = vpack.c.bf16 %v150_v8, %v148_v7  ;;  %v152_v14 = vld [vmem:[#allocation7 + $0x28] sm:$0xff]  ;;  %v154_v15 = vld [vmem:[#allocation7 + $0x38] sm:$0xff] }
  0x3b   :  { %311 = vmatpush3.bf16.msra.mxu0 %v310_v5  ;;  %v317_v13 = vpack.c.bf16 %v149_v10, %v147_v9  ;;  %v151_v16 = vld [vmem:[#allocation7 + $0x20] sm:$0xff]  ;;  %v319_v17 = vpack.c.bf16 %v154_v15, %v152_v14  ;;  %v153_v18 = vld [vmem:[#allocation7 + $0x30] sm:$0xff]  ;;  %v156_v19 = vld [vmem:[#allocation7 + $0x48] sm:$0xff]  ;;  %v187_v2 = vsub.s32 1, %v182_v63 }
  0x3c   :  { %312 = vmatprep.subr.bf16.mxu0 %v459_v0  ;;  %v158_v20 = vld [vmem:[#allocation7 + $0x58] sm:$0xff]  ;;  %316 = vmatprep.subr.bf16.mxu1 %v315_v12  ;;  %v321_v21 = vpack.c.bf16 %v153_v18, %v151_v16  ;;  %v155_v24 = vld [vmem:[#allocation7 + $0x40] sm:$0xff]  ;;  %v157_v25 = vld [vmem:[#allocation7 + $0x50] sm:$0xff]  ;;  %v183_v0 = vsub.s32 0, %v182_v63 }
  0x3d   :  { %318 = vmatpush1.bf16.msra.mxu1 %v317_v13  ;;  %v60_v22 = vld [vmem:[#allocation2] sm:$0x3]  ;;  %v323_v23 = vpack.c.bf16 %v158_v20, %v156_v19  ;;  %v160_v26 = vld [vmem:[#allocation7 + $0x68] sm:$0xff]  ;;  %v325_v28 = vpack.c.bf16 %v157_v25, %v155_v24  ;;  %v159_v30 = vld [vmem:[#allocation7 + $0x60] sm:$0xff] }
  0x3e   :  { %320 = vmatprep.subr.bf16.mxu1 %v319_v17  ;;  %v162_v27 = vld [vmem:[#allocation7 + $0x78] sm:$0xff]  ;;  %v161_v31 = vld [vmem:[#allocation7 + $0x70] sm:$0xff]  ;;  %v164_v32 = vld [vmem:[#allocation7 + $0x88] sm:$0xff] }
  0x3f   :  { %314 = vmatpush3.bf16.msra.mxu0 %v313_v11  ;;  %v327_v29 = vpack.c.bf16 %v162_v27, %v160_v26  ;;  %v166_v33 = vld [vmem:[#allocation7 + $0x98] sm:$0xff]  ;;  %v329_v34 = vpack.c.bf16 %v161_v31, %v159_v30  ;;  %v163_v36 = vld [vmem:[#allocation7 + $0x80] sm:$0xff]  ;;  %v165_v37 = vld [vmem:[#allocation7 + $0x90] sm:$0xff] }
  0x40   :  { %v331_v35 = vpack.c.bf16 %v166_v33, %v164_v32  ;;  %v168_v38 = vld [vmem:[#allocation7 + $0xa8] sm:$0xff]  ;;  %v170_v39 = vld [vmem:[#allocation7 + $0xb8] sm:$0xff]  ;;  %v333_v40 = vpack.c.bf16 %v165_v37, %v163_v36  ;;  %v167_v42 = vld [vmem:[#allocation7 + $0xa0] sm:$0xff] }
  0x41   :  { %322 = vmatpush1.bf16.msra.mxu1 %v321_v21  ;;  %v335_v41 = vpack.c.bf16 %v170_v39, %v168_v38  ;;  %v169_v43 = vld [vmem:[#allocation7 + $0xb0] sm:$0xff]  ;;  %v172_v44 = vld [vmem:[#allocation7 + $0xc8] sm:$0xff]  ;;  %v174_v45 = vld [vmem:[#allocation7 + $0xd8] sm:$0xff] }
  0x42   :  { %307 = vmatmul.mubr.msk.f32.vlgmr.msra.gmra.mrb[0].mxu0 %vm72_vm1, %v60_v22  ;;  %324 = vmatprep.subr.bf16.mxu1 %v323_v23  ;;  %v337_v46 = vpack.c.bf16 %v169_v43, %v167_v42  ;;  %v339_v47 = vpack.c.bf16 %v174_v45, %v172_v44  ;;  %v171_v48 = vld [vmem:[#allocation7 + $0xc0] sm:$0xff]  ;;  %v173_v49 = vld [vmem:[#allocation7 + $0xd0] sm:$0xff]  ;;  %v176_v51 = vld [vmem:[#allocation7 + $0xe8] sm:$0xff] }
  0x43   :  { %v341_v50 = vpack.c.bf16 %v173_v49, %v171_v48  ;;  %v178_v52 = vld [vmem:[#allocation7 + $0xf8] sm:$0xff]  ;;  %v175_v54 = vld [vmem:[#allocation7 + $0xe0] sm:$0xff]  ;;  %v177_v55 = vld [vmem:[#allocation7 + $0xf0] sm:$0xff] }
  0x44   :  { %v343_v53 = vpack.c.bf16 %v178_v52, %v176_v51  ;;  %v345_v56 = vpack.c.bf16 %v177_v55, %v175_v54  ;;  %v290_v57 = vld [vmem:[%s549_s2] ss:$0 sm:$0xff]  ;;  %s280_s2 = sshll.u32 %s462_s9, 4  ;;  %s281_s2 = int_to_ptr.vmem [resolvable:$true] %s280_s2 }
  0x45   :  { %326 = vmatpush1.bf16.msra.mxu1 %v325_v28  ;;  %v179_v1 = vld [vmem:[%s551_s4] sm:$0x3]  ;;  %s424_s10 = scalar_lea.vmem %s281_s2, 64  ;;  %p429_p11 = scmp.lt.s32.totalorder %s281_s2, %s281_s2 }
  0x46   :  { %328 = vmatprep.subr.bf16.mxu1 %v327_v29  ;;  %v184_v3 = vrot.slane %v179_v1, %v183_v0  ;;  %v188_v4 = vrot.slane %v179_v1, %v187_v2  ;;  %p425_p10 = scmp.ne.s32.totalorder %s281_s2, %s424_s10  ;;  %p430_p12 = scmp.lt.s32.totalorder %s424_s10, %s424_s10 }
  0x48   :  { %p431_p13 = por %p430_p12, %p429_p11 }
  0x49   :  { %330 = vmatpush1.bf16.msra.mxu1 %v329_v34 }
  0x4a   :  { %332 = vmatprep.subr.bf16.mxu1 %v331_v35  ;;  %p432_p0 = pnand %p431_p13, %p425_p10 }
  0x4d   :  { %334 = vmatpush1.bf16.msra.mxu1 %v333_v40 }
  0x4e   :  { %336 = vmatprep.subr.bf16.mxu1 %v335_v41 }
  0x51   :  { %338 = vmatpush1.bf16.msra.mxu1 %v337_v46 }
  0x52   :  { %340 = vmatprep.subr.bf16.mxu1 %v339_v47 }
  0x55   :  { %342 = vmatpush1.bf16.msra.mxu1 %v341_v50 }
  0x56   :  { %344 = vmatprep.subr.bf16.mxu1 %v343_v53 }
  0x59   :  { %346 = vmatpush1.bf16.msra.mxu1 %v345_v56 }
 0x115   :  { %v142_v58 = vpop.f32.mrb[0].mxu0 }
 0x116   :  { %v143_v59 = vadd.f32 %v290_v57, %v142_v58  ;;  %v308_v60 = vpop.f32.mrb[1].mxu0 }
 0x118   :  { %v146_v61 = vmax.f32 %v143_v59, 0.0 }
 0x11a   :  { %256 = vmatmul.mubr.f32.vlgmr.msra.gmra.mrb[0].mxu1 %v146_v61 }
 0x1ed   :  { %v257_v5 = vpop.f32.mrb[0].mxu1 }
 0x1ee   :  { %v258_v6 = vadd.f32 %v257_v5, %v184_v3  ;;  %v259_v7 = vpop.f32.mrb[1].mxu1 }
 0x1ef   :  { %v260_v8 = vadd.f32 %v259_v7, %v188_v4 }
 0x1f1   :  { %v264_v9 = vcombine.low %v258_v6, %v260_v8 }
 0x1f3   :  { %292 = vst.sshfl [vmem:[#allocation8] sm:$0x33 pattern:$0x76325410] %v264_v9 }
 0x1f4   :  { %435 = shalt.err (!%p432_p0)
}
 0x1f5   :  { %s436_s12 = scalar_lea.hbm %s552_s5, 64 }
 0x1f6   :  { %p437_p1 = scmp.ne.s32.totalorder %s552_s5, %s436_s12  ;;  %p440_p2 = scmp.lt.u32.totalorder %s436_s12, %s552_s5 }
 0x1f8   :  { %p442_p3 = pnand %p440_p2, %p437_p1 }
 0x1fa   :  { %445 = shalt.err (!%p442_p3)
}
 0x1fb   :  { %283 = dma.vmem_to_hbm [thread:$0]  %s281_s2, 64, %s552_s5, [#allocation4]  }
 0x1fc   :  { %450 = dma.done.wait [#allocation4], 64  }
 0x1fd   :  { %451 = vsyncadd [#allocation4], 4294967232 }
 0x1fe   :  { %287 = vsyncpa [#allocation3], 1 }
 0x1ff   :  { %288 = vsyncpa [#allocation6], 1 }
 0x200   :  { %289 = vsyncpa [#allocation4], 1 }

</bundles_post_ra>
